<compile_context>
chip_gen: v7x
topology: tpu7x:2x2x1
jax: 0.10.0
libtpu: 0.0.40
codegen_flags: <defaults>
</compile_context>

<pallas_src>
import functools

import jax
import jax.numpy as jnp
from jax.experimental import pallas as pl
from jax.experimental.pallas import tpu as pltpu


def _round_up(n, m):
    return ((n + m - 1) // m) * m


def _linear_skip_kernel(x_ref, w_ref, b_ref, o_ref, *, use_skip):
    # x_ref: (TILE_B, n_in) bf16, w_ref: (n_in, n_out) bf16, b_ref: (1, n_out) f32
    x = x_ref[...]
    # MXU matmul: bf16 inputs, f32 accumulation.
    h = jnp.dot(x, w_ref[...], preferred_element_type=jnp.float32)
    h = h + b_ref[...]
    # LeakyReLU, negative_slope = 0.01 (nn.LeakyReLU default); math on f32 accumulator.
    h = jnp.where(h >= 0, h, 0.01 * h)
    if use_skip:
        # skip connection (only when n_input == n_output)
        h = h + x.astype(jnp.float32)
    # Dropout: identity at inference.
    o_ref[...] = h.astype(o_ref.dtype)


def linear_skip_forward(x, w, b, *, tile_b=1024):
    """Forward pass of Linear_skip_block (eval mode).

    x: (B, n_input) f32
    w: (n_input, n_output) f32  -- transposed vs. PyTorch nn.Linear.weight
    b: (1, n_output) f32
    """
    B, n_in = x.shape
    n_out = w.shape[1]
    use_skip = (n_in == n_out)

    # bf16 for the bandwidth-dominant operands; bias stays f32 (added post-accumulate).
    x_bf = x.astype(jnp.bfloat16)
    w_bf = w.astype(jnp.bfloat16)
    b_f32 = b.astype(jnp.float32).reshape(1, n_out)

    # Tile the batch dim; pad B up so the grid covers it exactly.
    tile_b = int(min(tile_b, _round_up(B, 8)))
    b_pad = _round_up(B, tile_b)
    if b_pad != B:
        x_bf = jnp.pad(x_bf, ((0, b_pad - B), (0, 0)))
    grid = (b_pad // tile_b,)

    kernel = functools.partial(_linear_skip_kernel, use_skip=use_skip)

    out = pl.pallas_call(
        kernel,
        out_shape=jax.ShapeDtypeStruct((b_pad, n_out), jnp.float32),
        grid=grid,
        in_specs=[
            pl.BlockSpec((tile_b, n_in), lambda i: (i, 0)),   # x: tiled over batch
            pl.BlockSpec((n_in, n_out), lambda i: (0, 0)),    # W: resident in VMEM
            pl.BlockSpec((1, n_out), lambda i: (0, 0)),       # b: resident in VMEM
        ],
        out_specs=pl.BlockSpec((tile_b, n_out), lambda i: (i, 0)),
        compiler_params=pltpu.CompilerParams(
            dimension_semantics=("parallel",),  # megacore sharding on v7x
        ),
    )(x_bf, w_bf, b_f32)

    return out[:B]


def linear_skip_reference(x, w, b):
    """Pure-JAX reference using the same bf16-input / f32-accumulate numerics."""
    n_in, n_out = w.shape
    x_bf = x.astype(jnp.bfloat16)
    w_bf = w.astype(jnp.bfloat16)
    h = jnp.dot(x_bf, w_bf, preferred_element_type=jnp.float32)
    h = h + b.astype(jnp.float32).reshape(1, n_out)
    h = jnp.where(h >= 0, h, 0.01 * h)
    if n_in == n_out:
        h = h + x_bf.astype(jnp.float32)
    return h


if __name__ == "__main__":
    key = jax.random.PRNGKey(0)
    # n_input == n_output -> skip connection is active (the module's defining feature).
    # Feature dim 128 keeps loads/stores lane-dense.
    B, n_feat = 256, 128

    k_x, k_w, k_b = jax.random.split(key, 3)
    x = jax.random.normal(k_x, (B, n_feat), jnp.float32)
    bound = 1.0 / (n_feat ** 0.5)  # nn.Linear default init range
    w = jax.random.uniform(k_w, (n_feat, n_feat), jnp.float32, -bound, bound)
    b = jax.random.uniform(k_b, (1, n_feat), jnp.float32, -bound, bound)

    # tile_b=128 -> grid of 2 batch tiles (exercises the pipelined grid even at small B).
    out = linear_skip_forward(x, w, b, tile_b=128)
    out = jax.block_until_ready(out)

    ref = linear_skip_reference(x, w, b)
    assert out.shape == (B, n_feat)
    assert jnp.allclose(out, ref, atol=1e-2, rtol=1e-2)

    print("KERNEL_OK")
</pallas_src>

<mosaic_0001>
module attributes {stable_mosaic.version = 11 : i64} {
  func.func @_linear_skip_kernel(%arg0: i32, %arg1: memref<128x128xbf16, #tpu.memory_space<vmem>>, %arg2: memref<128x128xbf16, #tpu.memory_space<vmem>>, %arg3: memref<1x128xf32, #tpu.memory_space<vmem>>, %arg4: memref<128x128xf32, #tpu.memory_space<vmem>>) attributes {dimension_semantics = [#tpu.dimension_semantics<parallel>], iteration_bounds = array<i64: 2>, scalar_prefetch = 0 : i64, scratch_operands = 0 : i64, tpu.core_type = #tpu.core_type<tc>, window_params = [{transform_indices = @transform_0, window_bounds = array<i64: 128, 128>}, {pipeline_mode = #tpu.pipeline_mode<synchronous>, transform_indices = @transform_1, window_bounds = array<i64: 128, 128>}, {pipeline_mode = #tpu.pipeline_mode<synchronous>, transform_indices = @transform_2, window_bounds = array<i64: 1, 128>}, {transform_indices = @transform_3, window_bounds = array<i64: 128, 128>}]} {
    %c0 = arith.constant 0 : index
    %c0_0 = arith.constant 0 : index
    %0 = vector.load %arg1[%c0, %c0_0] : memref<128x128xbf16, #tpu.memory_space<vmem>>, vector<128x128xbf16>
    %c0_1 = arith.constant 0 : index
    %c0_2 = arith.constant 0 : index
    %1 = vector.load %arg2[%c0_1, %c0_2] : memref<128x128xbf16, #tpu.memory_space<vmem>>, vector<128x128xbf16>
    %cst = arith.constant dense<0.000000e+00> : vector<128x128xf32>
    %2 = tpu.matmul %0, %1, %cst {dimension_numbers = #tpu.dot_dimension_numbers<[1], [0], [0], [1], [0, 0, 1, 1], [], []>} : vector<128x128xbf16>, vector<128x128xbf16>, vector<128x128xf32> -> vector<128x128xf32>
    %c0_3 = arith.constant 0 : index
    %c0_4 = arith.constant 0 : index
    %3 = vector.load %arg3[%c0_3, %c0_4] : memref<1x128xf32, #tpu.memory_space<vmem>>, vector<1x128xf32>
    %4 = vector.broadcast %3 : vector<1x128xf32> to vector<128x128xf32>
    %5 = arith.addf %2, %4 : vector<128x128xf32>
    %cst_5 = arith.constant 0.000000e+00 : f32
    %6 = vector.broadcast %cst_5 : f32 to vector<128x128xf32>
    %7 = arith.cmpf oge, %5, %6 : vector<128x128xf32>
    %cst_6 = arith.constant 0.00999999977 : f32
    %8 = vector.broadcast %cst_6 : f32 to vector<128x128xf32>
    %9 = arith.mulf %8, %5 : vector<128x128xf32>
    %10 = arith.select %7, %5, %9 : vector<128x128xi1>, vector<128x128xf32>
    %11 = arith.extf %0 : vector<128x128xbf16> to vector<128x128xf32>
    %12 = arith.addf %10, %11 : vector<128x128xf32>
    %c0_7 = arith.constant 0 : index
    %c0_8 = arith.constant 0 : index
    %13 = vector.load %arg4[%c0_7, %c0_8] : memref<128x128xf32, #tpu.memory_space<vmem>>, vector<128x128xf32>
    tpu.vector_store %arg4[%c0_7, %c0_8], %12 {strides = array<i32>} : memref<128x128xf32, #tpu.memory_space<vmem>>, vector<128x128xf32>,
    return
  }
  func.func @transform_0(%arg0: i32) -> (i32, i32) {
    %c0_i32 = arith.constant 0 : i32
    %c0_i32_0 = arith.constant 0 : i32
    return %arg0, %c0_i32 : i32, i32
  }
  func.func @transform_1(%arg0: i32) -> (i32, i32) {
    %c0_i32 = arith.constant 0 : i32
    %c0_i32_0 = arith.constant 0 : i32
    %c0_i32_1 = arith.constant 0 : i32
    return %c0_i32, %c0_i32_0 : i32, i32
  }
  func.func @transform_2(%arg0: i32) -> (i32, i32) {
    %c0_i32 = arith.constant 0 : i32
    %c0_i32_0 = arith.constant 0 : i32
    %c0_i32_1 = arith.constant 0 : i32
    return %c0_i32, %c0_i32_0 : i32, i32
  }
  func.func @transform_3(%arg0: i32) -> (i32, i32) {
    %c0_i32 = arith.constant 0 : i32
    %c0_i32_0 = arith.constant 0 : i32
    return %arg0, %c0_i32 : i32, i32
  }
}

</mosaic_0001>

<bundles_post_ra>
// kernel: tpu_custom_call.1
= control target key start
LH: loop header
LB: loop body
LE: loop exit
PB: predicated region body
PF: predicated region fallthrough
CT: control target
= control target key end

     0   :  { %8 = vsyncpa [#allocation3], 0  ;;  %s1289_s0 = inlined_call_operand.hbm [shape: bf16[256,128], index: 0, kind: input, shape index: {}]   ;;  %s1290_s1 = inlined_call_operand.hbm [shape: bf16[128,128], index: 1, kind: input, shape index: {}]   ;;  %s1291_s2 = inlined_call_operand.vmem [shape: f32[1,128], index: 2, kind: input, shape index: {}]   ;;  %s1292_s3 = inlined_call_operand.hbm [shape: f32[256,128], index: 3, kind: output, shape index: {}]  }
   0x1   :  { %10 = vsyncpa [#allocation3 + $0x1], 0 }
   0x2   :  { %11 = vsyncpa [#allocation6], 0 }
   0x3   :  { %12 = vsyncpa [#allocation4], 0 }
   0x4   :  { %14 = vsyncpa [#allocation4 + $0x1], 0  ;;  %s973_s12 = smov 0   ;;  %s975_s13 = smov 0  }
   0x5   :  { %s977_s14 = smov 0   ;;  %s979_s15 = smov 0  }
   0x6 LB: > { %s994_s16 = sadd.s32 4294967295, %s944_s15   ;;  %s632_s17 = sadd.s32 4294967294, %s944_s15   ;;  %s944_s15 = sphi %s979_s15, %s1312_s15   ;;  %s940_s14 = sphi %s977_s14, %s1311_s14   ;;  %s936_s13 = sphi %s975_s13, %s1310_s13   ;;  %s932_s12 = sphi %s973_s12, %s1309_s12  }
   0x7   : > { %p40_p0 = scmp.ne.s32.totalorder %s936_s13, %s932_s12  ;;  %p1293_p1 = scmp.eq.s32.totalorder %s994_s16, 0 }
   0x8   : > { %p112_p3 = scmp.eq.s32.totalorder %s632_s17, 1  ;;  %p633_p5 = scmp.ge.s32.totalorder %s944_s15, 1 }
   0x9   : > { %p1003_p4 = por %p1293_p1, %p40_p0  ;;  %p119_p7 = scmp.lt.s32.totalorder %s944_s15, 3 }
   0xa   : > { %p1008_p6 = por %p112_p3, %p40_p0  ;;  %s946_s21 = smov [#allocation5]  }
   0xb   : > { %s1296_s18 = scalar_select %p1003_p4, 1, 0 }
   0xc   : > { %s1297_s19 = scalar_select %p1008_p6, 1, 0 }
   0xd   : > { %p1013_p8 = pnand %p633_p5, %p119_p7  ;;  %s131_s22 = sshll.u32 %s946_s21, 4  ;;  %s1017_s22 = int_to_ptr.vmem [resolvable:$true] %s131_s22 }
   0xe   : > { %s1029_s24 = sadd.s32 1, %s944_s15   ;;  %s27_s25 = sadd.s32 1, %s940_s14 }
   0xf   : > { %s1298_s20 = scalar_select %p1013_p8, 1, 0 }
  0x10   : > { %p739_p9 = pneg %p1013_p8  ;;  %s24_s26 = ssub.s32 %s944_s15, %s1029_s24 }
  0x11   : > { %s816_s29 = scalar_lea.hbm %s1290_s1, 1024 }
  0x12   : > { %p1024_p11 = pnand %p739_p9, %p1293_p1  ;;  %p817_p12 = scmp.ne.s32.totalorder %s1290_s1, %s816_s29 }
  0x13   : > { %p823_p5 = scmp.lt.u32.totalorder %s816_s29, %s1290_s1 }
  0x14   : > { %p818_p13 = pneg %p1024_p11 }
  0x16   : > { %p819_p0 = pnand %p818_p13, %p817_p12 }
  0x18   : > { %p820_p3 = pneg %p819_p0 }
  0x1a   : > { %p825_p7 = pnand %p823_p5, %p820_p3 }
  0x1c   : > { %828 = shalt.err (!%p825_p7)
}
  0x1d   : > { %s829_s7 = scalar_lea.vmem %s1017_s22, 1024  ;;  %p837_p2 = scmp.lt.s32.totalorder %s1017_s22, %s1017_s22 }
  0x1e   : > { %p830_p9 = scmp.ne.s32.totalorder %s1017_s22, %s829_s7  ;;  %p838_p6 = scmp.lt.s32.totalorder %s829_s7, %s829_s7 }
  0x20   : > { %p832_p10 = pnand %p830_p9, %p818_p13  ;;  %p839_p4 = por %p838_p6, %p837_p2 }
  0x22   : > { %p833_p1 = pneg %p832_p10 }
  0x24   : > { %p840_p8 = pnand %p839_p4, %p833_p1 }
  0x26   : > { %843 = shalt.err (!%p840_p8)
}
  0x27   : > { %s947_s8 = smov 64   ;;  %s948_s9 = smov 4  }
  0x28   : > { %742 = dma.hbm_to_vmem [thread:$0]  (!%p1024_p11), %s1290_s1, 1024, %s1017_s22, [#allocation6], %s947_s8, %s947_s8, %s948_s9  }
  0x29   : > { %p25_p1 = scmp.eq.s32.totalorder %s24_s26, 0  ;;  %p34_p2 = scmp.ne.s32.totalorder %s940_s14, %s936_s13 }
  0x2a   : > { %p35_p4 = scmp.eq.s32.totalorder %s944_s15, 0  ;;  %p752_p6 = scmp.lt.s32.totalorder %s944_s15, 2 }
  0x2b   : > { %s1063_s17 = scalar_select %p25_p1, %s940_s14, %s27_s25  }
  0x2c   : > { %p36_p8 = por %p35_p4, %p34_p2  ;;  %p1300_p10 = scmp.eq.s32.totalorder %s994_s16, 1 }
  0x2d   : > { %s148_s23 = sand.u32 1, %s940_s14   ;;  %s665_s27 = sshll.u32 %s944_s15, 10 }
  0x2e   : > { %p1067_p12 = por %p1300_p10, %p34_p2  ;;  %s636_s28 = sshll.u32 %s148_s23, 6 }
  0x2f   : > { %s1076_s4 = scalar_lea.hbm %s1289_s0, %s665_s27  ;;  %s152_s22 = scalar_lea.vmem [#allocation2], %s636_s28 }
  0x30   : > { %s159_s25 = sshll.u32 %s152_s22, 4  ;;  %p1078_p11 = pnand %p752_p6, %p36_p8  ;;  %s1082_s25 = int_to_ptr.vmem [resolvable:$true] %s159_s25 }
  0x31   : > { %s1084_s5 = scalar_lea.sflag [#allocation3], %s148_s23  ;;  %s844_s6 = scalar_lea.hbm %s1076_s4, 1024 }
  0x32   : > { %p845_p13 = scmp.ne.s32.totalorder %s1076_s4, %s844_s6  ;;  %p846_p0 = pneg %p1078_p11 }
  0x33   : > { %s849_s11 = scalar_lea.hbm %s1289_s0, 2048  ;;  %p850_p7 = scmp.lt.u32.totalorder %s1076_s4, %s1289_s0 }
  0x34   : > { %p847_p3 = pnand %p846_p0, %p845_p13  ;;  %p851_p9 = scmp.lt.u32.totalorder %s849_s11, %s844_s6 }
  0x35   : > { %p853_p2 = scmp.lt.u32.totalorder %s844_s6, %s1076_s4 }
  0x36   : > { %p848_p5 = pneg %p847_p3  ;;  %p852_p1 = por %p851_p9, %p850_p7 }
  0x38   : > { %p854_p4 = por %p853_p2, %p852_p1 }
  0x3a   : > { %p855_p6 = pnand %p854_p4, %p848_p5 }
  0x3c   : > { %858 = shalt.err (!%p855_p6)
}
  0x3d   : > { %s859_s23 = scalar_lea.vmem %s1082_s25, 1024  ;;  %s949_s29 = smov [#allocation2]  }
  0x3e   : > { %p860_p8 = scmp.ne.s32.totalorder %s1082_s25, %s859_s23  ;;  %s864_s30 = sshll.u32 %s949_s29, 4  ;;  %s865_s30 = int_to_ptr.vmem [resolvable:$false] %s864_s30 }
  0x3f   : > { %s866_s22 = scalar_lea.vmem %s865_s30, 2048  ;;  %p867_p3 = scmp.lt.s32.totalorder %s1082_s25, %s865_s30 }
  0x40   : > { %p862_p10 = pnand %p860_p8, %p846_p0  ;;  %p868_p7 = scmp.lt.s32.totalorder %s866_s22, %s859_s23 }
  0x42   : > { %p863_p13 = pneg %p862_p10  ;;  %p869_p9 = por %p868_p7, %p867_p3 }
  0x44   : > { %p870_p1 = pnand %p869_p9, %p863_p13 }
  0x46   : > { %873 = shalt.err (!%p870_p1)
}
  0x47   : > { %746 = dma.hbm_to_vmem [thread:$0]  (!%p1078_p11), %s1076_s4, 1024, %s1082_s25, %s1084_s5, %s947_s8, %s947_s8, %s948_s9  }
  0x48   : > { %p1303_p0 = scmp.ne.s32.totalorder %s1298_s20, 0 }
  0x49   : > { %s1118_s6 = sand.u32 (!%p1303_p0), 1, %s936_s13   ;;  %p1304_p5 = scmp.ne.s32.totalorder (!%p1303_p0), %s1296_s18, 0 }
  0x4a   : > { %171 = sbr.rel (%p1303_p0) target bundleno = 370 (0x172), region = 32  ;;  %s640_s7 = sshll.u32 (!%p1303_p0), %s1118_s6, 6 }
  0x4b   : > { %s174_s10 = scalar_lea.sflag (!%p1303_p0), [#allocation3], %s1118_s6  ;;  %s1122_s11 = scalar_lea.vmem (!%p1303_p0), [#allocation2], %s640_s7 }
  0x51   : > { %919 = dma.done.wait (%p1304_p5), %s174_s10, 1024  }
  0x52   : > { %921 = vsyncadd (%p1304_p5), %s174_s10, 4294966272  ;;  %p1305_p11 = scmp.eq.s32.totalorder %s994_s16, 0 }
  0x54   : > { %923 = dma.done.wait (%p1305_p11), [#allocation6], 1024   ;;  %p1306_p2 = pmov %p1305_p11 }
  0x55   : > { %v792_v0 = vld [vmem:[#allocation5] sm:$0xff]   ;;  %v793_v1 = vld [vmem:[#allocation5 + $0x8] sm:$0xff]   ;;  %v794_v2 = vld [vmem:[#allocation5 + $0x10] sm:$0xff]   ;;  %s642_s8 = sshll.u32 %s1118_s6, 7  ;;  %s666_s4 = sshll.u32 %s994_s16, 11 }
  0x56   : > { %925 = vsyncadd (%p1306_p2), [#allocation6], 4294966272  ;;  %683 = vmatprep.subr.bf16.mxu0 %v792_v0  ;;  %715 = vmatprep.subr.bf16.mxu1 %v792_v0  ;;  %v795_v3 = vld [vmem:[#allocation5 + $0x18] sm:$0xff]   ;;  %v1133_v4 = vld [vmem:[%s1122_s11] sm:$0xff]   ;;  %s1190_s9 = scalar_lea.vmem [#allocation7], %s642_s8  ;;  %s1236_s16 = scalar_lea.hbm %s1292_s3, %s666_s4 }
  0x57   : > { %684 = vmatpush3.bf16.msra.mxu0 %v792_v0  ;;  %723 = vmatpush3.bf16.msra.mxu1 %v792_v0  ;;  %v1136_v5 = vld [vmem:[%s1122_s11 + $0x20] sm:$0xff]   ;;  %v797_v7 = vld [vmem:[#allocation5 + $0x28] sm:$0xff]   ;;  %v798_v8 = vld [vmem:[#allocation5 + $0x30] sm:$0xff]   ;;  %v487_v16 = vunpack.c.l.bf16 %v1133_v4  ;;  %v488_v17 = vunpack.c.h.bf16 %v1133_v4  ;;  %s549_s25 = sshll.u32 %s1190_s9, 4  ;;  %s536_s27 = scalar_lea.sflag [#allocation4], %s1118_s6  ;;  %s1238_s25 = int_to_ptr.vmem [resolvable:$true] %s549_s25 }
  0x58   : > { %685 = vmatprep.subr.bf16.mxu0 %v793_v1  ;;  %716 = vmatprep.subr.bf16.mxu1 %v793_v1  ;;  %v796_v6 = vld [vmem:[#allocation5 + $0x20] sm:$0xff]   ;;  %v799_v9 = vld [vmem:[#allocation5 + $0x38] sm:$0xff]   ;;  %v1141_v10 = vld [vmem:[%s1122_s11 + $0x8] sm:$0xff]   ;;  %v495_v19 = vunpack.c.l.bf16 %v1136_v5  ;;  %v496_v20 = vunpack.c.h.bf16 %v1136_v5  ;;  %s874_s28 = scalar_lea.vmem %s1238_s25, 2048  ;;  %s950_s23 = smov [#allocation7]  }
  0x59   : > { %699 = vmatprep.mubr.bf16.mxu0 %v1133_v4  ;;  %707 = vmatprep.mubr.bf16.mxu1 %v1136_v5  ;;  %v1144_v11 = vld [vmem:[%s1122_s11 + $0x28] sm:$0xff]   ;;  %v1147_v12 = vld [vmem:[%s1122_s11 + $0x10] sm:$0xff]   ;;  %v1157_v14 = vld [vmem:[%s1122_s11 + $0x18] sm:$0xff]   ;;  %v489_v21 = vunpack.c.l.bf16 %v1141_v10  ;;  %v490_v22 = vunpack.c.h.bf16 %v1141_v10  ;;  %p875_p4 = scmp.ne.s32.totalorder %s1238_s25, %s874_s28  ;;  %s878_s29 = sshll.u32 %s950_s23, 4  ;;  %s879_s29 = int_to_ptr.vmem [resolvable:$false] %s878_s29 }
  0x5a   : > { %v1150_v13 = vld [vmem:[%s1122_s11 + $0x30] sm:$0xff]   ;;  %v1160_v15 = vld [vmem:[%s1122_s11 + $0x38] sm:$0xff]   ;;  %v1169_v18 = vld [vmem:[%s1291_s2] ss:$0 sm:$0xff]  ;;  %v497_v23 = vunpack.c.l.bf16 %v1144_v11  ;;  %v498_v24 = vunpack.c.h.bf16 %v1144_v11  ;;  %v491_v25 = vunpack.c.l.bf16 %v1147_v12  ;;  %v492_v26 = vunpack.c.h.bf16 %v1147_v12  ;;  %s880_s30 = scalar_lea.vmem %s879_s29, 4096  ;;  %p881_p10 = scmp.lt.s32.totalorder %s1238_s25, %s879_s29 }
  0x5b   : > { %686 = vmatpush3.bf16.msra.mxu0 %v793_v1  ;;  %724 = vmatpush3.bf16.msra.mxu1 %v793_v1  ;;  %v499_v29 = vunpack.c.l.bf16 %v1150_v13  ;;  %v500_v30 = vunpack.c.h.bf16 %v1150_v13  ;;  %v493_v35 = vunpack.c.l.bf16 %v1157_v14  ;;  %v494_v36 = vunpack.c.h.bf16 %v1157_v14  ;;  %p876_p6 = pnand %p875_p4, %p1067_p12  ;;  %p882_p13 = scmp.lt.s32.totalorder %s880_s30, %s874_s28 }
  0x5c   : > { %687 = vmatprep.subr.bf16.mxu0 %v794_v2  ;;  %717 = vmatprep.subr.bf16.mxu1 %v794_v2  ;;  %v501_v63 = vunpack.c.l.bf16 %v1160_v15 }
  0x5d   : > { %p877_p8 = pneg %p876_p6  ;;  %p883_p3 = por %p882_p13, %p881_p10 }
  0x5f   : > { %688 = vmatpush3.bf16.msra.mxu0 %v794_v2  ;;  %725 = vmatpush3.bf16.msra.mxu1 %v794_v2  ;;  %p884_p7 = pnand %p883_p3, %p877_p8 }
  0x60   : > { %689 = vmatprep.subr.bf16.mxu0 %v795_v3  ;;  %718 = vmatprep.subr.bf16.mxu1 %v795_v3 }
  0x63   : > { %690 = vmatpush3.bf16.msra.mxu0 %v795_v3  ;;  %726 = vmatpush3.bf16.msra.mxu1 %v795_v3 }
  0x64   : > { %691 = vmatprep.subr.bf16.mxu0 %v796_v6  ;;  %719 = vmatprep.subr.bf16.mxu1 %v796_v6 }
  0x67   : > { %692 = vmatpush3.bf16.msra.mxu0 %v796_v6  ;;  %727 = vmatpush3.bf16.msra.mxu1 %v796_v6 }
  0x68   : > { %693 = vmatprep.subr.bf16.mxu0 %v797_v7  ;;  %720 = vmatprep.subr.bf16.mxu1 %v797_v7 }
  0x6b   : > { %694 = vmatpush3.bf16.msra.mxu0 %v797_v7  ;;  %728 = vmatpush3.bf16.msra.mxu1 %v797_v7 }
  0x6c   : > { %695 = vmatprep.subr.bf16.mxu0 %v798_v8  ;;  %721 = vmatprep.subr.bf16.mxu1 %v798_v8 }
  0x6f   : > { %696 = vmatpush3.bf16.msra.mxu0 %v798_v8  ;;  %729 = vmatpush3.bf16.msra.mxu1 %v798_v8 }
  0x70   : > { %697 = vmatprep.subr.bf16.mxu0 %v799_v9  ;;  %722 = vmatprep.subr.bf16.mxu1 %v799_v9 }
  0x73   : > { %698 = vmatpush3.bf16.msra.mxu0 %v799_v9  ;;  %730 = vmatpush3.bf16.msra.mxu1 %v799_v9 }
  0x76   : > { %700 = vmatmul.mubr.bf16.vlgmr.msra.gmra.mrb[0].mxu0 %v1141_v10  ;;  %708 = vmatmul.mubr.bf16.vlgmr.msra.gmra.mrb[0].mxu1 %v1144_v11 }
  0x77   : > { %703 = vmatprep.mubr.bf16.mxu0 %v1147_v12  ;;  %711 = vmatprep.mubr.bf16.mxu1 %v1150_v13 }
  0x7e   : > { %704 = vmatmul.mubr.bf16.gmra.mrb[4].mxu0 %v1157_v14  ;;  %712 = vmatmul.mubr.bf16.gmra.mrb[4].mxu1 %v1160_v15 }
 0x149   : > { %v701_v27 = vpop.f32.mrb[0].mxu0  ;;  %v709_v28 = vpop.f32.mrb[0].mxu1 }
 0x14a   : > { %v385_v31 = vadd.f32 %v701_v27, %v1169_v18  ;;  %v417_v32 = vadd.f32 %v709_v28, %v1169_v18  ;;  %v376_v33 = vpop.f32.mrb[1].mxu0  ;;  %v408_v34 = vpop.f32.mrb[1].mxu1 }
 0x14b   : > { %v377_v37 = vadd.f32 %v1169_v18, %v376_v33  ;;  %v409_v38 = vadd.f32 %v1169_v18, %v408_v34  ;;  %v702_v39 = vpop.f32.mrb[2].mxu0  ;;  %v710_v40 = vpop.f32.mrb[2].mxu1 }
 0x14c   : > { %vm441_vm0 = vcmp.ge.f32.partialorder %v385_v31, 0.0  ;;  %v457_v41 = vmul.f32 0.01, %v385_v31  ;;  %vm449_vm1 = vcmp.ge.f32.partialorder %v417_v32, 0.0  ;;  %v465_v42 = vmul.f32 0.01, %v417_v32 }
 0x14d   : > { %vm439_vm2 = vcmp.ge.f32.partialorder %v377_v37, 0.0  ;;  %v455_v43 = vmul.f32 0.01, %v377_v37  ;;  %vm447_vm3 = vcmp.ge.f32.partialorder %v409_v38, 0.0  ;;  %v463_v44 = vmul.f32 0.01, %v409_v38 }
 0x14e   : > { %v473_v45 = vsel %vm441_vm0, %v385_v31, %v457_v41  ;;  %v481_v46 = vsel %vm449_vm1, %v417_v32, %v465_v42  ;;  %v388_v47 = vadd.f32 %v702_v39, %v1169_v18  ;;  %v420_v48 = vadd.f32 %v710_v40, %v1169_v18  ;;  %v379_v49 = vpop.f32.mrb[3].mxu0  ;;  %v411_v50 = vpop.f32.mrb[3].mxu1 }
 0x14f   : > { %v505_v51 = vadd.f32 %v489_v21, %v473_v45  ;;  %v513_v52 = vadd.f32 %v497_v23, %v481_v46  ;;  %v471_v53 = vsel %vm439_vm2, %v377_v37, %v455_v43  ;;  %v479_v54 = vsel %vm447_vm3, %v409_v38, %v463_v44 }
 0x150   : > { %v503_v55 = vadd.f32 %v487_v16, %v471_v53  ;;  %v511_v56 = vadd.f32 %v495_v19, %v479_v54  ;;  %vm442_vm4 = vcmp.ge.f32.partialorder %v388_v47, 0.0  ;;  %v458_v57 = vmul.f32 0.01, %v388_v47 }
 0x151   : > { %521 = vst [vmem:[%s1190_s9 + $0x10] sm:$0xff] %v505_v51  ;;  %529 = vst [vmem:[%s1190_s9 + $0x50] sm:$0xff] %v513_v52  ;;  %vm450_vm5 = vcmp.ge.f32.partialorder %v420_v48, 0.0  ;;  %v466_v58 = vmul.f32 0.01, %v420_v48  ;;  %v380_v59 = vadd.f32 %v1169_v18, %v379_v49  ;;  %v412_v60 = vadd.f32 %v1169_v18, %v411_v50  ;;  %v705_v61 = vpop.f32.mrb[4].mxu0 }
 0x152   : > { %v713_v62 = vpop.f32.mrb[4].mxu1  ;;  %519 = vst [vmem:[%s1190_s9] sm:$0xff] %v503_v55  ;;  %527 = vst [vmem:[%s1190_s9 + $0x40] sm:$0xff] %v511_v56  ;;  %v474_v0 = vsel %vm442_vm4, %v388_v47, %v458_v57  ;;  %v401_v1 = vadd.f32 %v705_v61, %v1169_v18  ;;  %v392_v3 = vpop.f32.mrb[5].mxu0  ;;  %v502_v44 = vunpack.c.h.bf16 %v1160_v15 }
 0x153   : > { %v433_v2 = vadd.f32 %v713_v62, %v1169_v18  ;;  %v424_v6 = vpop.f32.mrb[5].mxu1  ;;  %v506_v7 = vadd.f32 %v490_v22, %v474_v0  ;;  %v482_v8 = vsel %vm450_vm5, %v420_v48, %v466_v58  ;;  %vm440_vm6 = vcmp.ge.f32.partialorder %v380_v59, 0.0  ;;  %v706_v10 = vpop.f32.mrb[6].mxu0 }
 0x154   : > { %v456_v9 = vmul.f32 0.01, %v380_v59  ;;  %v714_v16 = vpop.f32.mrb[6].mxu1  ;;  %v514_v19 = vadd.f32 %v498_v24, %v482_v8  ;;  %vm448_vm7 = vcmp.ge.f32.partialorder %v412_v60, 0.0  ;;  %v464_v21 = vmul.f32 0.01, %v412_v60 }
 0x155   : > { %vm445_vm8 = vcmp.ge.f32.partialorder %v401_v1, 0.0  ;;  %v395_v23 = vpop.f32.mrb[7].mxu0  ;;  %v427_v27 = vpop.f32.mrb[7].mxu1  ;;  %522 = vst [vmem:[%s1190_s9 + $0x18] sm:$0xff] %v506_v7  ;;  %v461_v31 = vmul.f32 0.01, %v401_v1  ;;  %v393_v11 = vadd.f32 %v1169_v18, %v392_v3  ;;  %v425_v24 = vadd.f32 %v1169_v18, %v424_v6 }
 0x156   : > { %v472_v28 = vsel %vm440_vm6, %v380_v59, %v456_v9  ;;  %vm453_vm9 = vcmp.ge.f32.partialorder %v433_v2, 0.0  ;;  %v469_v22 = vmul.f32 0.01, %v433_v2  ;;  %530 = vst [vmem:[%s1190_s9 + $0x58] sm:$0xff] %v514_v19  ;;  %v480_v33 = vsel %vm448_vm7, %v412_v60, %v464_v21 }
 0x157   : > { %v504_v32 = vadd.f32 %v488_v17, %v472_v28  ;;  %v512_v34 = vadd.f32 %v496_v20, %v480_v33  ;;  %v477_v37 = vsel %vm445_vm8, %v401_v1, %v461_v31  ;;  %v404_v39 = vadd.f32 %v706_v10, %v1169_v18 }
 0x158   : > { %v485_v38 = vsel %vm453_vm9, %v433_v2, %v469_v22  ;;  %v509_v40 = vadd.f32 %v493_v35, %v477_v37  ;;  %vm443_vm10 = vcmp.ge.f32.partialorder %v393_v11, 0.0  ;;  %v459_v17 = vmul.f32 0.01, %v393_v11 }
 0x159   : > { %520 = vst [vmem:[%s1190_s9 + $0x8] sm:$0xff] %v504_v32  ;;  %v517_v4 = vadd.f32 %v501_v63, %v485_v38  ;;  %528 = vst [vmem:[%s1190_s9 + $0x48] sm:$0xff] %v512_v34  ;;  %vm451_vm11 = vcmp.ge.f32.partialorder %v425_v24, 0.0  ;;  %v467_v41 = vmul.f32 0.01, %v425_v24  ;;  %vm446_vm12 = vcmp.ge.f32.partialorder %v404_v39, 0.0 }
 0x15a   : > { %v462_v42 = vmul.f32 0.01, %v404_v39  ;;  %525 = vst [vmem:[%s1190_s9 + $0x30] sm:$0xff] %v509_v40  ;;  %v475_v5 = vsel %vm443_vm10, %v393_v11, %v459_v17  ;;  %v436_v20 = vadd.f32 %v714_v16, %v1169_v18  ;;  %v396_v43 = vadd.f32 %v1169_v18, %v395_v23 }
 0x15b   : > { %533 = vst [vmem:[%s1190_s9 + $0x70] sm:$0xff] %v517_v4  ;;  %v428_v35 = vadd.f32 %v1169_v18, %v427_v27  ;;  %v507_v45 = vadd.f32 %v491_v25, %v475_v5  ;;  %v483_v46 = vsel %vm451_vm11, %v425_v24, %v467_v41 }
 0x15c   : > { %v478_v47 = vsel %vm446_vm12, %v404_v39, %v462_v42  ;;  %v515_v48 = vadd.f32 %v499_v29, %v483_v46  ;;  %vm454_vm13 = vcmp.ge.f32.partialorder %v436_v20, 0.0  ;;  %v470_v50 = vmul.f32 0.01, %v436_v20 }
 0x15d   : > { %v510_v49 = vadd.f32 %v494_v36, %v478_v47  ;;  %523 = vst [vmem:[%s1190_s9 + $0x20] sm:$0xff] %v507_v45  ;;  %vm444_vm14 = vcmp.ge.f32.partialorder %v396_v43, 0.0  ;;  %v460_v15 = vmul.f32 0.01, %v396_v43  ;;  %vm452_vm15 = vcmp.ge.f32.partialorder %v428_v35, 0.0 }
 0x15e   : > { %v468_v18 = vmul.f32 0.01, %v428_v35  ;;  %531 = vst [vmem:[%s1190_s9 + $0x60] sm:$0xff] %v515_v48  ;;  %v486_v25 = vsel %vm454_vm13, %v436_v20, %v470_v50 }
 0x15f   : > { %526 = vst [vmem:[%s1190_s9 + $0x38] sm:$0xff] %v510_v49  ;;  %v518_v29 = vadd.f32 %v502_v44, %v486_v25  ;;  %v476_v14 = vsel %vm444_vm14, %v396_v43, %v460_v15 }
 0x160   : > { %v484_v36 = vsel %vm452_vm15, %v428_v35, %v468_v18  ;;  %v508_v51 = vadd.f32 %v492_v26, %v476_v14 }
 0x161   : > { %v516_v52 = vadd.f32 %v500_v30, %v484_v36  ;;  %534 = vst [vmem:[%s1190_s9 + $0x78] sm:$0xff] %v518_v29 }
 0x162   : > { %524 = vst [vmem:[%s1190_s9 + $0x28] sm:$0xff] %v508_v51 }
 0x163   : > { %532 = vst [vmem:[%s1190_s9 + $0x68] sm:$0xff] %v516_v52 }
 0x164   : > { %887 = shalt.err (!%p884_p7)
}
 0x165   : > { %s888_s22 = scalar_lea.hbm %s1236_s16, 2048  ;;  %s892_s11 = scalar_lea.hbm %s1292_s3, 4096 }
 0x166   : > { %p889_p9 = scmp.ne.s32.totalorder %s1236_s16, %s888_s22  ;;  %p893_p5 = scmp.lt.u32.totalorder %s1236_s16, %s1292_s3 }
 0x167   : > { %p894_p11 = scmp.lt.u32.totalorder %s892_s11, %s888_s22  ;;  %p896_p4 = scmp.lt.u32.totalorder %s888_s22, %s1236_s16 }
 0x168   : > { %p890_p1 = pnand %p889_p9, %p1067_p12 }
 0x169   : > { %p895_p2 = por %p894_p11, %p893_p5 }
 0x16a   : > { %p891_p0 = pneg %p890_p1 }
 0x16b   : > { %p897_p6 = por %p896_p4, %p895_p2 }
 0x16d   : > { %p898_p8 = pnand %p897_p6, %p891_p0 }
 0x16f   : > { %901 = shalt.err (!%p898_p8)
}
 0x170   : > { %s951_s8 = smov 128   ;;  %s952_s9 = smov 8  }
 0x171   : > { %737 = dma.vmem_to_hbm [thread:$0]  (%p1067_p12), %s1238_s25, 2048, %s1236_s16, %s536_s27, %s951_s8, %s951_s8, %s952_s9  }
 0x172 PF: > { %s564_s4 = sand.u32 1, %s932_s12   ;;  %p1307_p10 = scmp.ne.s32.totalorder %s1297_s19, 0 }
 0x173   : > { %p1308_p13 = scmp.ge.s32.totalorder %s944_s15, 2  ;;  %s565_s26 = scalar_lea.sflag [#allocation4], %s564_s4 }
 0x175   : > { %p748_p3 = pnand %p1308_p13, %p1307_p10 }
 0x177   : > { %927 = dma.done.wait (!%p748_p3), %s565_s26, 2048  }
 0x178   : > { %929 = vsyncadd (!%p748_p3), %s565_s26, 4294965248  ;;  %p17_p7 = scmp.ge.s32.totalorder %s1029_s24, 4   ;;  %s1309_s12 = smov %s936_s13 }
 0x179   : > { %s1310_s13 = smov %s940_s14  ;;  %s1311_s14 = smov %s1063_s17 }
 0x17a   : > { %s1312_s15 = smov %s1029_s24  ;;  %19 = sbr.rel (!%p17_p7) target bundleno = 6 (0x6), region = 81 }
 0x181   :  { %570 = vsyncpa [#allocation3], 1 }
 0x182   :  { %572 = vsyncpa [#allocation3 + $0x1], 1 }
 0x183   :  { %573 = vsyncpa [#allocation6], 1 }
 0x184   :  { %574 = vsyncpa [#allocation4], 1 }
 0x185   :  { %576 = vsyncpa [#allocation4 + $0x1], 1 }

</bundles_post_ra>
